<compile_context>
chip_gen: v5e
topology: v5e:2x2
jax: 0.10.0
libtpu: 0.0.40
codegen_flags: <defaults>
</compile_context>

<pallas_src>
import functools

import numpy as np
import jax
import jax.numpy as jnp
from jax.experimental import pallas as pl
from jax.experimental.pallas import tpu as pltpu

_LANE = 128
_MAX_ROW_TILE = 256   # max output rows per grid step
_MAX_COL_TILE = 512   # max output cols per grid step


def _round_up(x, m):
    return (x + m - 1) // m * m


def _cdiv(a, b):
    return -(-a // b)


# ---------------------------------------------------------------------------
# Host-side anchor ranking (exact re-implementation of anchor_rank/box_iou).
# All inputs (anchors, areas, H, W) are host-known static values, so a Pallas
# kernel + device->host sync here would only add latency.
# ---------------------------------------------------------------------------
def _anchor_rank_host(anchors, areas, image_h, image_w, eps=1e-5):
    h, w = float(image_h), float(image_w)
    x1, y1, x2, y2 = anchors[:, 0], anchors[:, 1], anchors[:, 2], anchors[:, 3]
    area1 = areas
    # iou(anchors, input_image_bbox = [0, 0, W, H])
    inter = (np.maximum(np.minimum(x2, w) - np.maximum(x1, 0.0), 0.0)
             * np.maximum(np.minimum(y2, h) - np.maximum(y1, 0.0), 0.0))
    iou = inter / (area1 + w * h - inter + eps)
    # diag(iou(anchors, boxes3));  boxes3 = anchors with y2 -> (H/W) * x2
    b3_y2 = (h / w) * x2
    s_inter = (np.maximum(x2 - x1, 0.0)
               * np.maximum(np.minimum(y2, b3_y2) - y1, 0.0))
    # NOTE: area3 is intentionally unclamped (can be negative) -- this matches
    # box_area usage in the UReader reference; do not "fix".
    area3 = (x2 - x1) * (b3_y2 - y1)
    shape_iou = s_inter / (area1 + area3 - s_inter + eps)
    # np.argmax returns the first occurrence on ties (matches torch CPU argmax).
    return int(np.argmax(shape_iou * 100.0 + iou))


# ---------------------------------------------------------------------------
# Bilinear interpolation matrices (torchvision tensor-path BILINEAR,
# align_corners=False, no antialias), built on the host and cached.
# ---------------------------------------------------------------------------
def _bilinear_weights_np(in_size, out_size):
    scale = in_size / out_size
    dst = np.arange(out_size, dtype=np.float64)
    src = np.clip((dst + 0.5) * scale - 0.5, 0.0, in_size - 1)
    i0 = np.floor(src).astype(np.int64)
    i1 = np.minimum(i0 + 1, in_size - 1)
    frac = (src - i0).astype(np.float32)
    w = np.zeros((out_size, in_size), dtype=np.float32)
    rows = np.arange(out_size)
    np.add.at(w, (rows, i0), 1.0 - frac)
    np.add.at(w, (rows, i1), frac)
    return w  # (out_size, in_size)


@functools.lru_cache(maxsize=None)
def _interp_matrix(in_size, out_size, pad_out_to, transpose, dtype):
    """Cached, device-resident interpolation matrix.  Rows [out_size:pad_out_to]
    are zero (padding for tile/lane alignment); optionally pre-transposed."""
    w = np.zeros((pad_out_to, in_size), dtype=np.float32)
    w[:out_size] = _bilinear_weights_np(in_size, out_size)
    if transpose:
        w = np.ascontiguousarray(w.T)
    return jnp.asarray(w, dtype=dtype)


def _vmem_capacity_bytes():
    try:
        return int(pltpu.get_tpu_info().vmem_capacity_bytes)
    except Exception:
        return 64 << 20   # conservative fallback (v7x physical VMEM per TC)


# ---------------------------------------------------------------------------
# Pallas resize kernels: out[c] = Wy @ img[c] @ Wx^T  (two MXU matmuls, f32 acc)
# The image is read in its native dtype and cast in-kernel (cast hides under
# the MXU; avoids a standalone convert op + doubled input-side HBM traffic).
# ---------------------------------------------------------------------------
def _resize_rows_kernel(img_ref, wy_ref, wxt_ref, out_ref):
    # rows-first order, tiled over output rows: (Wy_tile @ img) @ Wx^T
    img = img_ref[0].astype(wy_ref.dtype)
    tmp = jnp.dot(wy_ref[...], img, preferred_element_type=jnp.float32)
    out = jnp.dot(tmp.astype(wxt_ref.dtype), wxt_ref[...],
                  preferred_element_type=jnp.float32)
    out_ref[0] = out.astype(out_ref.dtype)


def _resize_cols_kernel(img_ref, wy_ref, wxt_ref, out_ref):
    # cols-first order, tiled over output columns: Wy @ (img @ Wx^T_tile)
    img = img_ref[0].astype(wxt_ref.dtype)
    tmp = jnp.dot(img, wxt_ref[...], preferred_element_type=jnp.float32)
    out = jnp.dot(wy_ref[...], tmp.astype(wy_ref.dtype),
                  preferred_element_type=jnp.float32)
    out_ref[0] = out.astype(out_ref.dtype)


def resize_pallas(img, target_h, target_w, *, compute_dtype=jnp.bfloat16):
    """Bilinear resize of a CHW image via two MXU matmuls per channel."""
    C, H, W = img.shape
    out_dtype = img.dtype
    csize = np.dtype(compute_dtype).itemsize
    osize = np.dtype(out_dtype).itemsize
    isize = np.dtype(img.dtype).itemsize
    # Second-to-last-dim granularity: bf16 packs 2 rows per sublane -> 16,
    # f32 -> 8 (avoids Mosaic relayout / masked packing on Wy & output tiles).
    row_gran = 8 * max(1, 4 // min(csize, osize))

    # Host-side matmul-order selection (static shapes): pick the cheaper of
    #   rows-first: (Wy @ img) @ Wx^T     cols-first: Wy @ (img @ Wx^T)
    flops_rows_first = target_h * H * W + target_h * W * target_w
    flops_cols_first = H * W * target_w + H * target_w * target_h
    rows_first = flops_rows_first <= flops_cols_first

    if rows_first:
        w_pad = _round_up(target_w, _LANE)               # lane-dense stores
        n_tiles = _cdiv(target_h, _MAX_ROW_TILE)
        n_tiles += n_tiles & 1                           # even >= 2 (megacore)
        tile_h = _round_up(_cdiv(target_h, n_tiles), row_gran)
        h_pad = n_tiles * tile_h
        wy = _interp_matrix(H, target_h, h_pad, False, compute_dtype)   # (h_pad, H)
        wxt = _interp_matrix(W, target_w, w_pad, True, compute_dtype)   # (W, w_pad)
        kernel = _resize_rows_kernel
        in_specs = [
            pl.BlockSpec((1, H, W), lambda c, t: (c, 0, 0)),    # reused across row tiles
            pl.BlockSpec((tile_h, H), lambda c, t: (t, 0)),
            # grid-constant -> single pipeline buffer (saves dead VMEM on v7x)
            pl.BlockSpec((W, w_pad), lambda c, t: (0, 0),
                         pipeline_mode=pl.Buffered(1)),
        ]
        out_specs = pl.BlockSpec((1, tile_h, w_pad), lambda c, t: (c, t, 0))
        est_bytes = (2 * H * W * isize                  # img block, 2 buffers
                     + 2 * tile_h * H * csize           # Wy tile, 2 buffers
                     + W * w_pad * csize                # Wx^T, 1 buffer
                     + 2 * tile_h * w_pad * osize       # out tile, 2 buffers
                     + H * W * csize                    # in-kernel img cast copy
                     + tile_h * W * (4 + csize)         # f32 tmp + its cast copy
                     + tile_h * w_pad * 4)              # f32 out before cast
        flops = 2 * C * (h_pad * H * W + h_pad * W * w_pad)
    else:
        h_pad = _round_up(target_h, row_gran)
        n_tiles = _cdiv(_round_up(target_w, _LANE), _MAX_COL_TILE)
        n_tiles += n_tiles & 1                           # even >= 2 (megacore)
        tile_w = _round_up(_cdiv(target_w, n_tiles), _LANE)
        w_pad = n_tiles * tile_w
        wy = _interp_matrix(H, target_h, h_pad, False, compute_dtype)   # (h_pad, H)
        wxt = _interp_matrix(W, target_w, w_pad, True, compute_dtype)   # (W, w_pad)
        kernel = _resize_cols_kernel
        in_specs = [
            pl.BlockSpec((1, H, W), lambda c, t: (c, 0, 0)),    # reused across col tiles
            # grid-constant -> single pipeline buffer
            pl.BlockSpec((h_pad, H), lambda c, t: (0, 0),
                         pipeline_mode=pl.Buffered(1)),
            pl.BlockSpec((W, tile_w), lambda c, t: (0, t)),
        ]
        out_specs = pl.BlockSpec((1, h_pad, tile_w), lambda c, t: (c, 0, t))
        est_bytes = (2 * H * W * isize
                     + h_pad * H * csize
                     + 2 * W * tile_w * csize
                     + 2 * h_pad * tile_w * osize
                     + H * W * csize
                     + H * tile_w * (4 + csize)
                     + h_pad * tile_w * 4)
        flops = 2 * C * (H * W * w_pad + h_pad * H * w_pad)

    # Clamp to the chip's physical VMEM with headroom (v7x = 64 MiB, v5e/v6e =
    # 128 MiB); never request an impossible scoped limit.
    vmem_cap = int(0.9 * _vmem_capacity_bytes())
    vmem_bytes = int(min(max(est_bytes + (4 << 20), 32 << 20), vmem_cap))
    # TODO(synk): for multi-megapixel inputs (per-channel f32 block > ~8 MiB)
    # switch the Wy contraction to a row-band gather: scalar-prefetch per-tile
    # input-row starts, DMA only the (tile_h*scale + 1)-row band per step, and
    # use band-width Wy tiles.  That cuts MXU FLOPs 10-100x (matters on v5e)
    # and shrinks the per-step image footprint to fit v7x's 64 MiB.

    cost = pl.CostEstimate(
        flops=int(flops),
        transcendentals=0,
        bytes_accessed=int(C * H * W * isize + wy.size * csize
                           + wxt.size * csize + C * h_pad * w_pad * osize))

    out = pl.pallas_call(
        kernel,
        out_shape=jax.ShapeDtypeStruct((C, h_pad, w_pad), out_dtype),
        grid=(C, n_tiles),          # tile axis inner -> img block not re-fetched
        in_specs=in_specs,
        out_specs=out_specs,
        compiler_params=pltpu.CompilerParams(
            dimension_semantics=("parallel", "parallel"),
            vmem_limit_bytes=vmem_bytes),
        cost_estimate=cost,
    )(img, wy, wxt)
    return out[:, :target_h, :target_w]


# ---------------------------------------------------------------------------
# Module wrapper (mirrors AnchorResize)
# ---------------------------------------------------------------------------
class AnchorResizePallas:
    """Pallas/JAX port of UReader AnchorResize (tensor CHW path, bilinear)."""

    def __init__(self, image_size, anchors, compute_dtype=jnp.bfloat16):
        # anchors rows are [x1=0, y1=0, x2=cols*W, y2=rows*H]  (deterministic).
        self.image_size = image_size
        self.anchors = np.array(
            [[0.0, 0.0, a[1] * image_size[1], a[0] * image_size[0]] for a in anchors],
            dtype=np.float32)
        self.anchor_areas = ((self.anchors[:, 2] - self.anchors[:, 0])
                             * (self.anchors[:, 3] - self.anchors[:, 1]))
        # bfloat16 MXU operands with f32 accumulation (~1e-3 relative error vs.
        # exact torchvision parity).  Pass jnp.float32 if parity tests require it.
        self.compute_dtype = compute_dtype

    def forward(self, img, skip_resize=False):
        # img: (C, H, W) array (tensor path of F.resize).
        _, H, W = img.shape
        selected = _anchor_rank_host(self.anchors, self.anchor_areas, H, W)
        if skip_resize:
            return selected
        target_w = int(self.anchors[selected, 2])
        target_h = int(self.anchors[selected, 3])
        # F.resize(img, [target_size[1], target_size[0]]) => output (h, w)
        resized = resize_pallas(img, target_h, target_w,
                                compute_dtype=self.compute_dtype)
        return resized, selected

    __call__ = forward


if __name__ == "__main__":
    key = jax.random.PRNGKey(0)

    # Small deterministic setup: base image_size 16x16, 6 grid anchors.
    image_size = (16, 16)
    anchors = [(1, 1), (1, 2), (2, 1), (2, 2), (1, 3), (3, 1)]
    module = AnchorResizePallas(image_size, anchors)

    # Input image: C=3, H=20, W=28 (CHW layout).
    img = jax.random.uniform(key, (3, 20, 28), dtype=jnp.float32)

    resized, selected = module.forward(img)
    resized = jax.block_until_ready(resized)

    exp_w = int(module.anchors[selected, 2])
    exp_h = int(module.anchors[selected, 3])
    assert resized.shape == (3, exp_h, exp_w), resized.shape

    # Numerical check vs. a dense f32 host reference (bf16 tolerance).
    img_np = np.asarray(img)
    ref = np.einsum("oh,chw,pw->cop",
                    _bilinear_weights_np(img_np.shape[1], exp_h),
                    img_np,
                    _bilinear_weights_np(img_np.shape[2], exp_w))
    np.testing.assert_allclose(np.asarray(resized, dtype=np.float32), ref,
                               atol=3e-2, rtol=0)

    # Exercise the rows-first matmul-order branch as well (8x144 target).
    r2 = jax.block_until_ready(resize_pallas(img, 8, 144))
    assert r2.shape == (3, 8, 144), r2.shape
    ref2 = np.einsum("oh,chw,pw->cop",
                     _bilinear_weights_np(20, 8), img_np,
                     _bilinear_weights_np(28, 144))
    np.testing.assert_allclose(np.asarray(r2, dtype=np.float32), ref2,
                               atol=3e-2, rtol=0)

    # skip_resize path returns just the selected anchor index.
    assert module.forward(img, skip_resize=True) == selected

    print("KERNEL_OK")
</pallas_src>

<mosaic_0001>
module attributes {stable_mosaic.version = 11 : i64} {
  func.func @_resize_cols_kernel(%arg0: i32, %arg1: i32, %arg2: memref<1x20x28xf32, #tpu.memory_space<vmem>>, %arg3: memref<32x20xbf16, #tpu.memory_space<vmem>>, %arg4: memref<28x128xbf16, #tpu.memory_space<vmem>>, %arg5: memref<1x32x128xf32, #tpu.memory_space<vmem>>) attributes {dimension_semantics = [#tpu.dimension_semantics<parallel>, #tpu.dimension_semantics<parallel>], iteration_bounds = array<i64: 3, 2>, scalar_prefetch = 0 : i64, scratch_operands = 0 : i64, tpu.core_type = #tpu.core_type<tc>, window_params = [{transform_indices = @transform_0, window_bounds = array<i64: 1, 20, 28>}, {pipeline_mode = #tpu.pipeline_mode<synchronous>, transform_indices = @transform_1, window_bounds = array<i64: 32, 20>}, {transform_indices = @transform_2, window_bounds = array<i64: 28, 128>}, {transform_indices = @transform_3, window_bounds = array<i64: 1, 32, 128>}]} {
    %c0 = arith.constant 0 : index
    %c0_0 = arith.constant 0 : index
    %c0_1 = arith.constant 0 : index
    %0 = vector.load %arg2[%c0, %c0_0, %c0_1] : memref<1x20x28xf32, #tpu.memory_space<vmem>>, vector<1x20x28xf32>
    %1 = vector.shape_cast %0 : vector<1x20x28xf32> to vector<20x28xf32>
    %2 = arith.truncf %1 : vector<20x28xf32> to vector<20x28xbf16>
    %c0_2 = arith.constant 0 : index
    %c0_3 = arith.constant 0 : index
    %3 = vector.load %arg4[%c0_2, %c0_3] : memref<28x128xbf16, #tpu.memory_space<vmem>>, vector<28x128xbf16>
    %cst = arith.constant dense<0.000000e+00> : vector<20x128xf32>
    %4 = tpu.matmul %2, %3, %cst {dimension_numbers = #tpu.dot_dimension_numbers<[1], [0], [0], [1], [0, 0, 1, 1], [], []>} : vector<20x28xbf16>, vector<28x128xbf16>, vector<20x128xf32> -> vector<20x128xf32>
    %c0_4 = arith.constant 0 : index
    %c0_5 = arith.constant 0 : index
    %5 = vector.load %arg3[%c0_4, %c0_5] : memref<32x20xbf16, #tpu.memory_space<vmem>>, vector<32x20xbf16>
    %6 = arith.truncf %4 : vector<20x128xf32> to vector<20x128xbf16>
    %cst_6 = arith.constant dense<0.000000e+00> : vector<32x128xf32>
    %7 = tpu.matmul %5, %6, %cst_6 {dimension_numbers = #tpu.dot_dimension_numbers<[1], [0], [0], [1], [0, 0, 1, 1], [], []>} : vector<32x20xbf16>, vector<20x128xbf16>, vector<32x128xf32> -> vector<32x128xf32>
    %c0_7 = arith.constant 0 : index
    %c0_8 = arith.constant 0 : index
    %c0_9 = arith.constant 0 : index
    %8 = vector.load %arg5[%c0_7, %c0_8, %c0_9] : memref<1x32x128xf32, #tpu.memory_space<vmem>>, vector<1x32x128xf32>
    %9 = vector.shape_cast %8 : vector<1x32x128xf32> to vector<32x128xf32>
    %10 = vector.shape_cast %7 : vector<32x128xf32> to vector<1x32x128xf32>
    tpu.vector_store %arg5[%c0_7, %c0_8, %c0_9], %10 {strides = array<i32>} : memref<1x32x128xf32, #tpu.memory_space<vmem>>, vector<1x32x128xf32>,
    return
  }
  func.func @transform_0(%arg0: i32, %arg1: i32) -> (i32, i32, i32) {
    %c0_i32 = arith.constant 0 : i32
    %c0_i32_0 = arith.constant 0 : i32
    %c0_i32_1 = arith.constant 0 : i32
    return %arg0, %c0_i32, %c0_i32_0 : i32, i32, i32
  }
  func.func @transform_1(%arg0: i32, %arg1: i32) -> (i32, i32) {
    %c0_i32 = arith.constant 0 : i32
    %c0_i32_0 = arith.constant 0 : i32
    %c0_i32_1 = arith.constant 0 : i32
    return %c0_i32, %c0_i32_0 : i32, i32
  }
  func.func @transform_2(%arg0: i32, %arg1: i32) -> (i32, i32) {
    %c0_i32 = arith.constant 0 : i32
    %c0_i32_0 = arith.constant 0 : i32
    return %c0_i32, %arg1 : i32, i32
  }
  func.func @transform_3(%arg0: i32, %arg1: i32) -> (i32, i32, i32) {
    %c0_i32 = arith.constant 0 : i32
    %c0_i32_0 = arith.constant 0 : i32
    return %arg0, %c0_i32, %arg1 : i32, i32, i32
  }
}

</mosaic_0001>

<bundles_post_ra>
// kernel: tpu_custom_call.1
= control target key start
LH: loop header
LB: loop body
LE: loop exit
PB: predicated region body
PF: predicated region fallthrough
CT: control target
= control target key end

     0   :  { %s1154_s0 = inlined_call_operand.hbm [shape: f32[3,20,28], index: 0, kind: input, shape index: {}]   ;;  %s1155_s1 = inlined_call_operand.vmem [shape: bf16[32,20], index: 1, kind: input, shape index: {}]   ;;  %s1156_s2 = inlined_call_operand.hbm [shape: bf16[28,256], index: 2, kind: input, shape index: {}]   ;;  %s1157_s3 = inlined_call_operand.hbm [shape: f32[3,32,256], index: 3, kind: output, shape index: {}]  }
   0x1   :  { %1166 = sst [smem:[#allocation17_spill]] %s1154_s0 }
   0x2   :  { %1167 = sst [smem:[#allocation18_spill]] %s1155_s1 }
   0x3   :  { %1168 = sst [smem:[#allocation19_spill]] %s1157_s3 }
   0x4   :  { %8 = vsyncpa [#allocation3], 0 }
   0x5   :  { %10 = vsyncpa [#allocation3 + $0x1], 0 }
   0x6   :  { %11 = vsyncpa [#allocation6], 0 }
   0x7   :  { %13 = vsyncpa [#allocation6 + $0x1], 0 }
   0x8   :  { %14 = vsyncpa [#allocation4], 0 }
   0x9   :  { %16 = vsyncpa [#allocation4 + $0x1], 0  ;;  %s895_s12 = smov 0   ;;  %s897_s13 = smov 0  }
   0xa   :  { %s899_s14 = smov 0   ;;  %s901_s15 = smov 0  }
   0xb   :  { %s903_s16 = smov 0   ;;  %s905_s17 = smov 0  }
   0xc   :  { %s907_s18 = smov 0   ;;  %s909_s19 = smov 0  }
   0xd   :  { %s911_s20 = smov 0   ;;  %s913_s21 = smov 0  }
   0xe   :  { %s915_s22 = smov 0   ;;  %s917_s23 = smov 0  }
   0xf   :  { %s919_s24 = smov 0   ;;  %s921_s25 = smov 0  }
  0x10 LB: > { %1169 = sst [smem:[#allocation11_spill]] %s850_s21  ;;  %s472_s26 = sadd.s32 4294967295, %s866_s25   ;;  %s866_s25 = sphi %s921_s25, %s22_s25   ;;  %s862_s24 = sphi %s919_s24, %s1194_s24   ;;  %s858_s23 = sphi %s917_s23, %s1205_s23   ;;  %s854_s22 = sphi %s915_s22, %s1192_s22   ;;  %s850_s21 = sphi %s913_s21, %s1204_s21   ;;  %s846_s20 = sphi %s911_s20, %s1203_s20   ;;  %s842_s19 = sphi %s909_s19, %s1202_s19   ;;  %s838_s18 = sphi %s907_s18, %s1201_s18   ;;  %s834_s17 = sphi %s905_s17, %s1200_s17   ;;  %s830_s16 = sphi %s903_s16, %s1199_s16   ;;  %s826_s15 = sphi %s901_s15, %s1198_s15   ;;  %s822_s14 = sphi %s899_s14, %s1197_s14   ;;  %s818_s13 = sphi %s897_s13, %s1196_s13   ;;  %s814_s12 = sphi %s895_s12, %s1195_s12  }
  0x11   : > { %1170 = sst [smem:[#allocation12_spill]] %s862_s24  ;;  %s34_s27 = sadd.s32 1, %s862_s24 }
  0x12   : > { %p48_p0 = scmp.ne.s32.totalorder %s846_s20, %s842_s19  ;;  %p49_p1 = scmp.eq.s32.totalorder %s866_s25, 0 }
  0x13   : > { %p54_p2 = scmp.ne.s32.totalorder %s842_s19, %s838_s18  ;;  %p970_p3 = scmp.eq.s32.totalorder %s472_s26, 0 }
  0x14   : > { %p974_p4 = scmp.eq.s32.totalorder %s472_s26, 5  ;;  %p50_p5 = por %p49_p1, %p48_p0 }
  0x15   : > { %p982_p6 = por %p970_p3, %p54_p2  ;;  %p535_p7 = scmp.lt.s32.totalorder %s866_s25, 6 }
  0x16   : > { %s156_s5 = sand.u32 1, %s846_s20   ;;  %s516_s6 = smul.u32 24, %s862_s24 }
  0x17   : > { %s515_s7 = smul.u32 24, %s156_s5  ;;  %s1174_s0 = sld [smem:[#allocation17_spill]] }
  0x18   : > { %p525_p8 = pnand %p535_p7, %p50_p5  ;;  %s157_s28 = scalar_lea.sflag [#allocation3], %s156_s5 }
  0x19   : > { %s160_s18 = scalar_lea.vmem [#allocation2], %s515_s7  ;;  %s1158_s8 = smov 128  }
  0x1a   : > { %s168_s26 = sshll.u32 %s160_s18, 4  ;;  %p479_p9 = scmp.ge.s32.totalorder %s866_s25, 1  ;;  %s169_s26 = int_to_ptr.vmem [resolvable:$true] %s168_s26 }
  0x1b   : > { %p197_p10 = scmp.lt.s32.totalorder %s866_s25, 7  ;;  %s473_s9 = sadd.s32 4294967294, %s866_s25  }
  0x1c   : > { %s88_s5 = sadd.s32 1, %s834_s17  ;;  %p95_p13 = scmp.ne.s32.totalorder %s834_s17, %s830_s16 }
  0x1d   : > { %s165_s10 = scalar_lea.hbm %s1174_s0, %s516_s6  ;;  %s869_s6 = smov 8  }
  0x1e   : > { %s166_s11 = sshll.u32 %s165_s10, 4  ;;  %p998_p11 = pnand %p479_p9, %p197_p10  ;;  %s167_s11 = int_to_ptr.hbm [resolvable:$true] %s166_s11 }
  0x1f   : > { %527 = dma.hbm_to_vmem [thread:$0]  (!%p525_p8), %s167_s11, 384, %s169_s26, %s157_s28, %s1158_s8, %s1158_s8, %s869_s6  }
  0x20   : > { %s31_s10 = sadd.s32 1, %s858_s23  ;;  %p101_p0 = scmp.ne.s32.totalorder %s830_s16, %s826_s15 }
  0x21   : > { %p32_p12 = scmp.ge.s32.totalorder %s31_s10, 2  ;;  %s116_s18 = sadd.s32 1, %s822_s14 }
  0x22   : > { %p1019_p2 = por %p95_p13, %p49_p1  ;;  %p1025_p9 = por %p101_p0, %p970_p3 }
  0x23   : > { %s1207_s10 = smov (%p32_p12, %s31_s10), 0  ;;  %s1209_s27 = smov (!%p32_p12, %s34_s27), %s862_s24 }
  0x24   : > { %1176 = sst [smem:[#allocation13_spill]] %s1207_s10  ;;  %s85_s28 = ssub.s32 %s858_s23, %s1207_s10 }
  0x25   : > { %p36_p5 = scmp.ge.s32.totalorder %s1209_s27, 3  ;;  %p86_p8 = scmp.eq.s32.totalorder %s85_s28, 0 }
  0x26   : > { %p126_p10 = scmp.ne.s32.totalorder %s822_s14, %s818_s13  ;;  %p132_p13 = scmp.ne.s32.totalorder %s818_s13, %s814_s12 }
  0x27   : > { %s1211_s27 = smov (%p36_p5, %s1209_s27), 0  ;;  %s1183_s0 = sadd.s32 1, %s846_s20 }
  0x28   : > { %1179 = sst [smem:[#allocation14_spill]] %s1211_s27  ;;  %s38_s6 = ssub.s32 %s862_s24, %s1211_s27 }
  0x29   : > { %s1034_s26 = scalar_select %p86_p8, %s834_s17, %s88_s5  }
  0x2a   : > { %p1040_p1 = por %p974_p4, %p126_p10  ;;  %p39_p12 = scmp.eq.s32.totalorder %s38_s6, 0 }
  0x2b   : > { %1180 = sst [smem:[#allocation15_spill]] %s1034_s26  ;;  %s113_s29 = sor.u32 %s85_s28, %s38_s6 }
  0x2c   : > { %s1181_s8 = scalar_select %p1040_p1, 1, 0 }
  0x2d   : > { %p114_p3 = scmp.eq.s32.totalorder %s113_s29, 0  ;;  %p133_p0 = scmp.eq.s32.totalorder %s473_s9, 5 }
  0x2e   : > { %1182 = sst [smem:[#allocation16_spill]] %s1181_s8  ;;  %s178_s5 = sand.u32 1, %s834_s17  }
  0x2f   : > { %s1049_s10 = scalar_select %p39_p12, %s846_s20, %s1183_s0  }
  0x30   : > { %s1052_s3 = scalar_select %p114_p3, %s822_s14, %s116_s18  }
  0x31   : > { %s477_s26 = sshll.u32 %s178_s5, 4  ;;  %p1055_p5 = por %p133_p0, %p132_p13 }
  0x32   : > { %s478_s27 = sshll.u32 %s858_s23, 2  ;;  %s182_s24 = scalar_lea.vmem [#allocation5], %s477_s26 }
  0x33   : > { %s189_s8 = sshll.u32 %s182_s24, 4  ;;  %s186_s28 = scalar_lea.hbm %s1156_s2, %s478_s27  ;;  %s190_s8 = int_to_ptr.vmem [resolvable:$true] %s189_s8 }
  0x34   : > { %s187_s6 = sshll.u32 %s186_s28, 4  ;;  %p528_p4 = pnand %p535_p7, %p1019_p2  ;;  %s188_s6 = int_to_ptr.hbm [resolvable:$true] %s187_s6 }
  0x35   : > { %s179_s0 = scalar_lea.sflag [#allocation6], %s178_s5  ;;  %s870_s9 = smov 64  }
  0x36   : > { %s871_s18 = smov 4   ;;  %s1185_s29 = smov 128  }
  0x37   : > { %530 = dma.hbm_to_vmem [thread:$0]  (!%p528_p4), %s188_s6, 256, %s190_s8, %s179_s0, %s1185_s29, %s870_s9, %s871_s18  }
  0x38   : > { %201 = sbr.rel (%p998_p11) target bundleno = 364 (0x16c), region = 32  ;;  %s203_s24 = sand.u32 (!%p998_p11), 1, %s842_s19  }
  0x39   : > { %s517_s26 = smul.u32 (!%p998_p11), 24, %s203_s24  ;;  %s204_s1 = scalar_lea.sflag (!%p998_p11), [#allocation3], %s203_s24 }
  0x3b   : > { %s207_s21 = scalar_lea.vmem (!%p998_p11), [#allocation2], %s517_s26 }
  0x3d   : > { %801 = dma.done.wait (%p982_p6), %s204_s1, 384  }
  0x3e   : > { %803 = vsyncadd (%p982_p6), %s204_s1, 4294966912  ;;  %s213_s27 = sand.u32 1, %s830_s16  }
  0x3f   : > { %s480_s11 = sshll.u32 %s213_s27, 4  ;;  %s214_s5 = scalar_lea.sflag [#allocation6], %s213_s27 }
  0x40   : > { %s217_s8 = scalar_lea.vmem [#allocation5], %s480_s11 }
  0x41   : > { %805 = dma.done.wait (%p1025_p9), %s214_s5, 256  }
  0x42   : > { %807 = vsyncadd (%p1025_p9), %s214_s5, 4294967040  ;;  %v488_v0 = vld [vmem:[%s217_s8 + $0x8] sm:$0xf]  ;;  %v508_v1 = vld [vmem:[%s217_s8 + $0x8] sm:$0x30]  ;;  %vm274_vm0 = vcmask 1045504  }
  0x43   : > { %v489_v2 = vor.u32 %v508_v1, %v488_v0  ;;  %v507_v4 = vld [vmem:[%s217_s8] sm:$0xff]  ;;  %v247_v5 = vld [vmem:[%s207_s21] sm:$0xff]  ;;  %vm267_vm1 = vcmask 228352   ;;  %vm319_vm2 = vcmask 1041408   ;;  %s1186_s4 = sld [smem:[#allocation11_spill]]  ;;  %vm312_vm3 = vcmask 162816  }
  0x44   : > { %v248_v6 = vld [vmem:[%s207_s21 + $0x8] sm:$0xff]  ;;  %v249_v7 = vld [vmem:[%s207_s21 + $0x10] sm:$0xf]  ;;  %s1187_s28 = sld [smem:[#allocation18_spill]]  ;;  %s243_s9 = sand.u32 1, %s818_s13  }
  0x45   : > { %v276_v3 = vsel %vm274_vm0, %v489_v2, 0  ;;  %v250_v8 = vpack.c.bf16 %v248_v6, %v247_v5  ;;  %v251_v9 = vpack.c.bf16 %v249_v7, %v249_v7  ;;  %s481_s18 = sshll.u32 %s243_s9, 5  ;;  %s503_s29 = sshll.u32 %s854_s22, 3 }
  0x46   : > { %284 = vmatpush.bf16.msra.mxu0 %v276_v3  ;;  %511 = vmatpush.bf16.msra.mxu2 %v276_v3  ;;  %s245_s26 = scalar_lea.vmem [#allocation7], %s481_s18  ;;  %s1188_s11 = sld [smem:[#allocation19_spill]] }
  0x47   : > { %s360_s7 = sshll.u32 %s245_s26, 4  ;;  %s347_s22 = scalar_lea.sflag [#allocation4], %s243_s9  ;;  %s361_s7 = int_to_ptr.vmem [resolvable:$true] %s360_s7 }
  0x49   : > { %s357_s24 = sadd.s32 %s1186_s4, %s503_s29 }
  0x4a   : > { %285 = vmatpush.bf16.msra.mxu0 %v507_v4  ;;  %512 = vmatpush.bf16.msra.mxu2 %v507_v4  ;;  %v509_v16 = vld [vmem:[%s1187_s28] sm:$0xff]  ;;  %v510_v17 = vld [vmem:[%s1187_s28 + $0x8] sm:$0xff]  ;;  %s504_s1 = sshll.u32 %s357_s24, 3 }
  0x4c   : > { %s359_s8 = scalar_lea.hbm %s1188_s11, %s504_s1  ;;  %s736_s29 = scalar_lea.hbm %s1188_s11, 192 }
  0x4d   : > { %490 = vmatmul.msk.bf16.vlgmr.msra.gmra.mxu0 %vm267_vm1, %v250_v8  ;;  %491 = vmatmul.msk.bf16.vlgmr.msra.gmra.mxu2 %vm267_vm1, %v251_v9  ;;  %s362_s15 = sshll.u32 %s359_s8, 4  ;;  %s363_s15 = int_to_ptr.hbm [resolvable:$true] %s362_s15 }
  0x4e   : > { %s730_s4 = sshra.s32 %s363_s15, 4  ;;  %s731_s4 = int_to_ptr.hbm [resolvable:$true] %s730_s4 }
  0x4f   : > { %s732_s6 = scalar_lea.hbm %s731_s4, 32  ;;  %p737_p2 = scmp.lt.s32.totalorder %s731_s4, %s1188_s11 }
  0x50   : > { %p733_p6 = scmp.ne.s32.totalorder %s731_s4, %s732_s6  ;;  %p738_p8 = scmp.lt.s32.totalorder %s736_s29, %s732_s6 }
  0x52   : > { %p734_p7 = pnand %p733_p6, %p1040_p1  ;;  %p739_p9 = por %p738_p8, %p737_p2 }
  0x54   : > { %p735_p11 = pneg %p734_p7 }
  0x56   : > { %p740_p10 = pnand %p739_p9, %p735_p11 }
  0xca   : > { %v287_v10 = vpop.f32.mrf.mxu0 }
  0xd0   : > { %v292_v11 = vpop.f32.mrf.mxu2 }
  0xd1   : > { %v301_v12 = vpack.c.bf16 %v292_v11, %v292_v11 }
  0xd2   : > { %v289_v13 = vpop.f32.mrf.mxu0 }
  0xd3   : > { %v321_v14 = vsel %vm319_vm2, %v301_v12, 0  ;;  %v300_v15 = vpack.c.bf16 %v289_v13, %v287_v10 }
  0xd4   : > { %329 = vmatpush.bf16.msra.mxu1 %v321_v14  ;;  %513 = vmatpush.bf16.msra.mxu3 %v321_v14 }
  0xd8   : > { %v294_v18 = vpop.f32.mrf.mxu2  ;;  %330 = vmatpush.bf16.msra.mxu1 %v300_v15  ;;  %514 = vmatpush.bf16.msra.mxu3 %v300_v15 }
  0xdb   : > { %500 = vmatmul.msk.bf16.vlgmr.msra.gmra.mxu1 %vm312_vm3, %v509_v16  ;;  %501 = vmatmul.msk.bf16.vlgmr.msra.gmra.mxu3 %vm312_vm3, %v510_v17 }
 0x158   : > { %v332_v19 = vpop.f32.mrf.mxu1 }
 0x159   : > { %342 = vst [vmem:[%s245_s26] sm:$0xff] %v332_v19 }
 0x15e   : > { %v337_v20 = vpop.f32.mrf.mxu3 }
 0x15f   : > { %344 = vst [vmem:[%s245_s26 + $0x10] sm:$0xff] %v337_v20 }
 0x160   : > { %v334_v21 = vpop.f32.mrf.mxu1 }
 0x161   : > { %343 = vst [vmem:[%s245_s26 + $0x8] sm:$0xff] %v334_v21 }
 0x166   : > { %v339_v22 = vpop.f32.mrf.mxu3 }
 0x167   : > { %345 = vst [vmem:[%s245_s26 + $0x18] sm:$0xff] %v339_v22 }
 0x168   : > { %743 = shalt.err (!%p740_p10)
}
 0x169   : > { %s872_s9 = smov 128   ;;  %s873_s26 = smov 256  }
 0x16a   : > { %s874_s21 = smov 8  }
 0x16b   : > { %522 = dma.vmem_to_hbm [thread:$0]  (%p1040_p1), %s361_s7, 512, %s363_s15, %s347_s22, %s872_s9, %s873_s26, %s874_s21  }
 0x16c PF: > { %p536_p12 = scmp.ge.s32.totalorder %s866_s25, 2  ;;  %s377_s27 = sand.u32 1, %s814_s12  }
 0x16d   : > { %s378_s8 = scalar_lea.sflag [#allocation4], %s377_s27 }
 0x16e   : > { %p532_p3 = pnand %p536_p12, %p1055_p5 }
 0x170   : > { %p533_p13 = pneg %p532_p3 }
 0x172   : > { %809 = dma.done.wait (%p533_p13), %s378_s8, 512  }
 0x173   : > { %811 = vsyncadd (%p533_p13), %s378_s8, 4294966784  ;;  %s22_s25 = sadd.s32 1, %s866_s25   ;;  %s1191_s5 = sld [smem:[#allocation15_spill]] }
 0x174   : > { %p1107_p0 = scmp.ge.s32.totalorder %s22_s25, 8   ;;  %s1192_s22 = sld [smem:[#allocation12_spill]] }
 0x175   : > { %s1193_s30 = sld [smem:[#allocation13_spill]]  ;;  %s1195_s12 = smov %s818_s13 }
 0x176   : > { %s1194_s24 = sld [smem:[#allocation14_spill]]  ;;  %s1196_s13 = smov %s822_s14 }
 0x177   : > { %s1197_s14 = smov %s1052_s3  ;;  %s1198_s15 = smov %s830_s16 }
 0x178   : > { %s1199_s16 = smov %s834_s17  ;;  %s1201_s18 = smov %s842_s19 }
 0x179   : > { %s1200_s17 = smov %s1191_s5  ;;  %s1202_s19 = smov %s846_s20 }
 0x17a   : > { %s1203_s20 = smov %s1049_s10  ;;  %s1204_s21 = smov %s858_s23 }
 0x17b   : > { %s1205_s23 = smov %s1193_s30  ;;  %21 = sbr.rel (!%p1107_p0) target bundleno = 16 (0x10), region = 90 }
 0x180   :  { %384 = vsyncpa [#allocation3], 1 }
 0x181   :  { %386 = vsyncpa [#allocation3 + $0x1], 1 }
 0x182   :  { %387 = vsyncpa [#allocation6], 1 }
 0x183   :  { %389 = vsyncpa [#allocation6 + $0x1], 1 }
 0x184   :  { %390 = vsyncpa [#allocation4], 1 }
 0x185   :  { %392 = vsyncpa [#allocation4 + $0x1], 1 }

</bundles_post_ra>
